<compile_context>
chip_gen: v6e
topology: v6e:2x2x1
jax: 0.10.0
libtpu: 0.0.40
codegen_flags: <defaults>
</compile_context>

<pallas_src>
import functools

import jax
import jax.numpy as jnp
from jax.experimental import pallas as pl
from jax.experimental.pallas import tpu as pltpu

H_PAD = 128       # lane width of the packed hidden state
# TODO(synk): on v6e/v7x, H_PAD=256 (8 block-diag copies) would fill the
# 256-wide MXU; 128 is the native width on v5e, so keep 128 for portability.
TM_MAX = 1024     # max packed-row tile per grid step (multiple of 16)
SUB_TILES = 2     # independent sub-tiles per step (MXU matmul / EUP tanh overlap)
SPLIT_ROWS = 512  # packed-row count above which we force >= 2 grid steps (v7x 2 TCs)


def _round_up(x, m):
    return ((x + m - 1) // m) * m


def _cdiv(a, b):
    return (a + b - 1) // b


def _apply_act(z, activation):
    if activation == "ReLU":
        return jnp.maximum(z, 0.0)
    if activation == "Sigmoid":
        return jax.nn.sigmoid(z)
    return jnp.tanh(z)  # default Tanh (matches the PyTorch module default)


def _as_xt(inp):
    """Mirror PINN_V1.forward input handling: tensor or (x, t) tuple."""
    if isinstance(inp, tuple) and len(inp) == 2:
        x, t = inp
        if x.ndim == 1:
            x = x[:, None]
        if t.ndim == 1:
            t = t[:, None]
        return jnp.concatenate([x, t], axis=1)
    return inp


def _mlp_kernel(x_ref, w0_ref, wh_ref, b_ref, wf_ref, bf_ref, o_ref, *,
                n_layers, activation):
    """Full MLP forward for one tile of packed rows, processed as two
    interleaved sub-tiles so one sub-tile's matmul (MXU) overlaps the other's
    bias+activation (VPU/EUP).

    x_ref : (TM, NG*in_dim)         packed input, f32
    w0_ref: (NG*in_dim, H_PAD)      layer-0 weight, block-diag packed, f32 (VPU)
    wh_ref: (n_wh, H_PAD, H_PAD)    hidden weights, block-diag packed, bf16 (MXU)
    b_ref : (n_layers-1, 1, H_PAD)  biases of all non-final layers, f32
    wf_ref: (H_PAD, NG*out_dim)     final weight, compact output columns, bf16
    bf_ref: (1, NG*out_dim)         final bias, f32
    o_ref : (TM, NG*out_dim)        packed output, f32
    """
    tm = x_ref.shape[0]
    half = tm // SUB_TILES
    kp = w0_ref.shape[0]

    # Hoisted loop invariants (read once, reused by every sub-tile / layer).
    w0_rows = [w0_ref[k:k + 1, :] for k in range(kp)]    # each (1, H_PAD) f32
    b0 = b_ref[0]                                        # (1, H_PAD) f32
    wf = wf_ref[...]                                     # (H_PAD, NG*out_dim) bf16
    bf = bf_ref[...]                                     # (1, NG*out_dim) f32

    # --- Layer 0: K = NG*in_dim is tiny -> VPU broadcast multiply-adds in f32
    #     (no 64x-padded input DMA, no degenerate MXU matmul).
    # TODO(synk): for large in_dim this VPU loop gets long; move layer 0 to the
    # MXU in that case.
    halves = []
    for s in range(SUB_TILES):
        xs = x_ref[s * half:(s + 1) * half, :]           # (half, kp) f32
        acc = xs[:, 0:1] * w0_rows[0]
        for k in range(1, kp):
            acc = acc + xs[:, k:k + 1] * w0_rows[k]
        halves.append(_apply_act(acc + b0, activation))  # layer 0 is never final

    # --- Hidden layers: block-diagonal bf16 MXU matmuls, f32 accumulate,
    #     f32 bias + activation.
    for i in range(1, n_layers - 1):
        w = wh_ref[i - 1]                                # (H_PAD, H_PAD) bf16
        bi = b_ref[i]                                    # (1, H_PAD) f32
        halves = [
            _apply_act(
                jnp.dot(halves[s].astype(jnp.bfloat16), w,
                        preferred_element_type=jnp.float32) + bi,
                activation)
            for s in range(SUB_TILES)
        ]

    # --- Final layer: compact packed output columns (NG*out_dim wide), so the
    #     store is last-dim == full-array-dim (no 128-lane slice / relayout).
    for s in range(SUB_TILES):
        z = jnp.dot(halves[s].astype(jnp.bfloat16), wf,
                    preferred_element_type=jnp.float32) + bf
        o_ref[s * half:(s + 1) * half, :] = z.astype(o_ref.dtype)


def init_pinn_params(key, layers):
    """Per-layer (W, b): xavier_normal_ weights (stored as (fan_in, fan_out)),
    zero biases — matches the PyTorch module's init."""
    if len(layers) < 3:
        raise ValueError("Se requieren al menos 3 capas (entrada, oculta, salida)")
    params = []
    for i in range(len(layers) - 1):
        fan_in, fan_out = layers[i], layers[i + 1]
        key, sub = jax.random.split(key)
        std = (2.0 / (fan_in + fan_out)) ** 0.5          # xavier_normal_ gain=1
        w = std * jax.random.normal(sub, (fan_in, fan_out), jnp.float32)
        b = jnp.zeros((fan_out,), jnp.float32)           # constant_(bias, 0)
        params.append((w, b))
    return params


def pack_params(params, layers):
    """Block-diagonally pack per-layer weights into MXU-friendly tiles.

    NG = H_PAD // max(hidden width) independent batch groups share every
    128x128 weight; hidden/final MXU weights are bf16, layer-0 weight and all
    biases stay f32.
    """
    n_layers = len(layers) - 1
    in_dim, out_dim = layers[0], layers[-1]
    gw = max(layers[1:-1])            # group lane width = widest hidden layer
    if gw > H_PAD:
        raise ValueError(f"hidden widths must be <= {H_PAD}")
    ng = H_PAD // gw                  # batch groups packed across the lane axis

    n_wh = max(1, n_layers - 2)       # keep a dummy slot if there is no 2nd hidden mm
    w0p = jnp.zeros((ng * in_dim, H_PAD), jnp.float32)
    whp = jnp.zeros((n_wh, H_PAD, H_PAD), jnp.bfloat16)
    bp = jnp.zeros((n_layers - 1, 1, H_PAD), jnp.float32)
    wfp = jnp.zeros((H_PAD, ng * out_dim), jnp.bfloat16)
    bfp = jnp.zeros((1, ng * out_dim), jnp.float32)

    w0, b0 = params[0]
    wl, bl = params[-1]
    wl = wl.astype(jnp.bfloat16)
    for g in range(ng):
        lo = g * gw
        w0p = w0p.at[g * in_dim:(g + 1) * in_dim, lo:lo + layers[1]].set(w0)
        bp = bp.at[0, 0, lo:lo + layers[1]].set(b0)
        wfp = wfp.at[lo:lo + layers[-2], g * out_dim:(g + 1) * out_dim].set(wl)
        bfp = bfp.at[0, g * out_dim:(g + 1) * out_dim].set(bl)
    for i in range(1, n_layers - 1):
        wi, bi = params[i]
        wi = wi.astype(jnp.bfloat16)
        for g in range(ng):
            lo = g * gw
            whp = whp.at[i - 1, lo:lo + layers[i], lo:lo + layers[i + 1]].set(wi)
            bp = bp.at[i, 0, lo:lo + layers[i + 1]].set(bi)

    return {"w0": w0p, "wh": whp, "b": bp, "wf": wfp, "bf": bfp,
            "ng": ng, "gw": gw}


def pinn_forward(inp, packed, layers, activation="Tanh"):
    """inp: [batch, layers[0]] (or (x, t) tuple) -> [batch, layers[-1]] f32."""
    n_layers = len(layers) - 1
    in_dim, out_dim = layers[0], layers[-1]
    ng = packed["ng"]

    xt = _as_xt(inp).astype(jnp.float32)
    batch = xt.shape[0]

    # Packed rows per group, 16-row aligned (two 8-row sub-tiles).  Batches
    # with many packed rows keep the grid >= 2 steps so the "parallel" axis can
    # split across both TensorCores on v7x; small batches use a single tile.
    r0 = _round_up(max(_cdiv(batch, ng), 1), SUB_TILES * 8)
    if r0 >= SPLIT_ROWS:
        tm = min(TM_MAX, _round_up(_cdiv(r0, 2), SUB_TILES * 8))
    else:
        tm = r0
    r_pad = _round_up(r0, tm)
    b_pad = ng * r_pad
    if b_pad != batch:
        xt = jnp.pad(xt, ((0, b_pad - batch), (0, 0)))

    # Pack ng batch groups across the lane axis: packed row r, lanes
    # [g*in_dim:(g+1)*in_dim] hold original row g*r_pad + r.  Pure layout
    # plumbing in the wrapper (tiny reshape/transpose), not compute hoisting.
    xp = xt.reshape(ng, r_pad, in_dim).transpose(1, 0, 2).reshape(r_pad, ng * in_dim)

    kernel = functools.partial(_mlp_kernel, n_layers=n_layers, activation=activation)
    n_wh = packed["wh"].shape[0]

    out = pl.pallas_call(
        kernel,
        out_shape=jax.ShapeDtypeStruct((r_pad, ng * out_dim), jnp.float32),
        grid_spec=pltpu.PrefetchScalarGridSpec(
            num_scalar_prefetch=0,
            grid=(r_pad // tm,),
            in_specs=[
                # Packed input: only the row axis is tiled; last dim equals the
                # full array dim (no 128-lane padding of the input DMA).
                pl.BlockSpec((tm, ng * in_dim), lambda i: (i, 0)),
                # Weights / biases: constant index_map -> same small tiles
                # (~100 KiB total) reused on every grid step.
                # TODO(synk): pipeline_mode=pl.Buffered(1) would drop their
                # useless second pipeline buffer; default kept for portability.
                pl.BlockSpec((ng * in_dim, H_PAD), lambda i: (0, 0)),
                pl.BlockSpec((n_wh, H_PAD, H_PAD), lambda i: (0, 0, 0)),
                pl.BlockSpec((n_layers - 1, 1, H_PAD), lambda i: (0, 0, 0)),
                pl.BlockSpec((H_PAD, ng * out_dim), lambda i: (0, 0)),
                pl.BlockSpec((1, ng * out_dim), lambda i: (0, 0)),
            ],
            out_specs=pl.BlockSpec((tm, ng * out_dim), lambda i: (i, 0)),
        ),
        compiler_params=pltpu.CompilerParams(
            dimension_semantics=("parallel",)),
    )(xp, packed["w0"], packed["wh"], packed["b"], packed["wf"], packed["bf"])

    # Unpack lane groups back into batch rows and drop padding.
    out = out.reshape(r_pad, ng, out_dim).transpose(1, 0, 2).reshape(b_pad, out_dim)
    return out[:batch, :]


def pinn_reference(inp, params, layers, activation="Tanh"):
    """Plain-JAX reference matching the PyTorch module semantics (weights for
    MXU layers rounded to bf16 exactly as stored by the kernel)."""
    n_layers = len(layers) - 1
    out = _as_xt(inp).astype(jnp.float32)
    for i, (w, b) in enumerate(params):
        if i > 0:  # layers 1.. are stored bf16 in the kernel
            w = w.astype(jnp.bfloat16).astype(jnp.float32)
        out = out @ w + b
        if i < n_layers - 1:
            out = _apply_act(out, activation)
    return out


if __name__ == "__main__":
    # PINN for Burgers: input (x, t) -> u(x, t);  layers = [2, 32, 32, 1]
    layers = [2, 32, 32, 1]
    key = jax.random.PRNGKey(0)
    pkey, xkey_small, xkey_large = jax.random.split(key, 3)

    params = init_pinn_params(pkey, layers)
    packed = pack_params(params, layers)

    # Small check (single grid step) and a larger one that exercises batch
    # padding, lane packing/unpacking and a multi-step grid.
    for batch, xkey in ((16, xkey_small), (2500, xkey_large)):
        xt = jax.random.uniform(xkey, (batch, 2), jnp.float32,
                                minval=-1.0, maxval=1.0)
        out = jax.block_until_ready(pinn_forward(xt, packed, layers))
        ref = pinn_reference(xt, params, layers)
        assert out.shape == (batch, 1), out.shape
        err = float(jnp.max(jnp.abs(out - ref)))
        # bf16 MXU operands with f32 accumulation -> small rounding error.
        assert err < 2e-2, err

    print("KERNEL_OK")
</pallas_src>

<mosaic_0001>
module attributes {stable_mosaic.version = 11 : i64} {
  func.func @_mlp_kernel(%arg0: i32, %arg1: memref<16x8xf32, #tpu.memory_space<vmem>>, %arg2: memref<8x128xf32, #tpu.memory_space<vmem>>, %arg3: memref<1x128x128xbf16, #tpu.memory_space<vmem>>, %arg4: memref<2x1x128xf32, #tpu.memory_space<vmem>>, %arg5: memref<128x4xbf16, #tpu.memory_space<vmem>>, %arg6: memref<1x4xf32, #tpu.memory_space<vmem>>, %arg7: memref<16x4xf32, #tpu.memory_space<vmem>>) attributes {dimension_semantics = [#tpu.dimension_semantics<parallel>], iteration_bounds = array<i64: 1>, scalar_prefetch = 0 : i64, scratch_operands = 0 : i64, tpu.core_type = #tpu.core_type<tc>, window_params = [{transform_indices = @transform_0, window_bounds = array<i64: 16, 8>}, {pipeline_mode = #tpu.pipeline_mode<synchronous>, transform_indices = @transform_1, window_bounds = array<i64: 8, 128>}, {pipeline_mode = #tpu.pipeline_mode<synchronous>, transform_indices = @transform_2, window_bounds = array<i64: 1, 128, 128>}, {pipeline_mode = #tpu.pipeline_mode<synchronous>, transform_indices = @transform_3, window_bounds = array<i64: 2, 1, 128>}, {pipeline_mode = #tpu.pipeline_mode<synchronous>, transform_indices = @transform_4, window_bounds = array<i64: 128, 4>}, {pipeline_mode = #tpu.pipeline_mode<synchronous>, transform_indices = @transform_5, window_bounds = array<i64: 1, 4>}, {transform_indices = @transform_6, window_bounds = array<i64: 16, 4>}]} {
    %c0 = arith.constant 0 : index
    %c0_0 = arith.constant 0 : index
    %0 = vector.load %arg2[%c0, %c0_0] : memref<8x128xf32, #tpu.memory_space<vmem>>, vector<1x128xf32>
    %c1 = arith.constant 1 : index
    %c0_1 = arith.constant 0 : index
    %1 = vector.load %arg2[%c1, %c0_1] : memref<8x128xf32, #tpu.memory_space<vmem>>, vector<1x128xf32>
    %c2 = arith.constant 2 : index
    %c0_2 = arith.constant 0 : index
    %2 = vector.load %arg2[%c2, %c0_2] : memref<8x128xf32, #tpu.memory_space<vmem>>, vector<1x128xf32>
    %c3 = arith.constant 3 : index
    %c0_3 = arith.constant 0 : index
    %3 = vector.load %arg2[%c3, %c0_3] : memref<8x128xf32, #tpu.memory_space<vmem>>, vector<1x128xf32>
    %c4 = arith.constant 4 : index
    %c0_4 = arith.constant 0 : index
    %4 = vector.load %arg2[%c4, %c0_4] : memref<8x128xf32, #tpu.memory_space<vmem>>, vector<1x128xf32>
    %c5 = arith.constant 5 : index
    %c0_5 = arith.constant 0 : index
    %5 = vector.load %arg2[%c5, %c0_5] : memref<8x128xf32, #tpu.memory_space<vmem>>, vector<1x128xf32>
    %c6 = arith.constant 6 : index
    %c0_6 = arith.constant 0 : index
    %6 = vector.load %arg2[%c6, %c0_6] : memref<8x128xf32, #tpu.memory_space<vmem>>, vector<1x128xf32>
    %c7 = arith.constant 7 : index
    %c0_7 = arith.constant 0 : index
    %7 = vector.load %arg2[%c7, %c0_7] : memref<8x128xf32, #tpu.memory_space<vmem>>, vector<1x128xf32>
    %c0_8 = arith.constant 0 : index
    %c0_9 = arith.constant 0 : index
    %c0_10 = arith.constant 0 : index
    %8 = vector.load %arg4[%c0_8, %c0_9, %c0_10] : memref<2x1x128xf32, #tpu.memory_space<vmem>>, vector<1x1x128xf32>
    %9 = vector.shape_cast %8 : vector<1x1x128xf32> to vector<1x128xf32>
    %c0_11 = arith.constant 0 : index
    %c0_12 = arith.constant 0 : index
    %10 = vector.load %arg5[%c0_11, %c0_12] : memref<128x4xbf16, #tpu.memory_space<vmem>>, vector<128x4xbf16>
    %c0_13 = arith.constant 0 : index
    %c0_14 = arith.constant 0 : index
    %11 = vector.load %arg6[%c0_13, %c0_14] : memref<1x4xf32, #tpu.memory_space<vmem>>, vector<1x4xf32>
    %c0_15 = arith.constant 0 : index
    %c0_16 = arith.constant 0 : index
    %12 = vector.load %arg1[%c0_15, %c0_16] : memref<16x8xf32, #tpu.memory_space<vmem>>, vector<8x8xf32>
    %13 = vector.extract_strided_slice %12 {offsets = [0, 0], sizes = [8, 1], strides = [1, 1]} : vector<8x8xf32> to vector<8x1xf32>
    %14 = vector.broadcast %13 : vector<8x1xf32> to vector<8x128xf32>
    %15 = vector.broadcast %0 : vector<1x128xf32> to vector<8x128xf32>
    %16 = arith.mulf %14, %15 : vector<8x128xf32>
    %17 = vector.extract_strided_slice %12 {offsets = [0, 1], sizes = [8, 1], strides = [1, 1]} : vector<8x8xf32> to vector<8x1xf32>
    %18 = vector.broadcast %17 : vector<8x1xf32> to vector<8x128xf32>
    %19 = vector.broadcast %1 : vector<1x128xf32> to vector<8x128xf32>
    %20 = arith.mulf %18, %19 : vector<8x128xf32>
    %21 = arith.addf %16, %20 : vector<8x128xf32>
    %22 = vector.extract_strided_slice %12 {offsets = [0, 2], sizes = [8, 1], strides = [1, 1]} : vector<8x8xf32> to vector<8x1xf32>
    %23 = vector.broadcast %22 : vector<8x1xf32> to vector<8x128xf32>
    %24 = vector.broadcast %2 : vector<1x128xf32> to vector<8x128xf32>
    %25 = arith.mulf %23, %24 : vector<8x128xf32>
    %26 = arith.addf %21, %25 : vector<8x128xf32>
    %27 = vector.extract_strided_slice %12 {offsets = [0, 3], sizes = [8, 1], strides = [1, 1]} : vector<8x8xf32> to vector<8x1xf32>
    %28 = vector.broadcast %27 : vector<8x1xf32> to vector<8x128xf32>
    %29 = vector.broadcast %3 : vector<1x128xf32> to vector<8x128xf32>
    %30 = arith.mulf %28, %29 : vector<8x128xf32>
    %31 = arith.addf %26, %30 : vector<8x128xf32>
    %32 = vector.extract_strided_slice %12 {offsets = [0, 4], sizes = [8, 1], strides = [1, 1]} : vector<8x8xf32> to vector<8x1xf32>
    %33 = vector.broadcast %32 : vector<8x1xf32> to vector<8x128xf32>
    %34 = vector.broadcast %4 : vector<1x128xf32> to vector<8x128xf32>
    %35 = arith.mulf %33, %34 : vector<8x128xf32>
    %36 = arith.addf %31, %35 : vector<8x128xf32>
    %37 = vector.extract_strided_slice %12 {offsets = [0, 5], sizes = [8, 1], strides = [1, 1]} : vector<8x8xf32> to vector<8x1xf32>
    %38 = vector.broadcast %37 : vector<8x1xf32> to vector<8x128xf32>
    %39 = vector.broadcast %5 : vector<1x128xf32> to vector<8x128xf32>
    %40 = arith.mulf %38, %39 : vector<8x128xf32>
    %41 = arith.addf %36, %40 : vector<8x128xf32>
    %42 = vector.extract_strided_slice %12 {offsets = [0, 6], sizes = [8, 1], strides = [1, 1]} : vector<8x8xf32> to vector<8x1xf32>
    %43 = vector.broadcast %42 : vector<8x1xf32> to vector<8x128xf32>
    %44 = vector.broadcast %6 : vector<1x128xf32> to vector<8x128xf32>
    %45 = arith.mulf %43, %44 : vector<8x128xf32>
    %46 = arith.addf %41, %45 : vector<8x128xf32>
    %47 = vector.extract_strided_slice %12 {offsets = [0, 7], sizes = [8, 1], strides = [1, 1]} : vector<8x8xf32> to vector<8x1xf32>
    %48 = vector.broadcast %47 : vector<8x1xf32> to vector<8x128xf32>
    %49 = vector.broadcast %7 : vector<1x128xf32> to vector<8x128xf32>
    %50 = arith.mulf %48, %49 : vector<8x128xf32>
    %51 = arith.addf %46, %50 : vector<8x128xf32>
    %52 = vector.broadcast %9 : vector<1x128xf32> to vector<8x128xf32>
    %53 = arith.addf %51, %52 : vector<8x128xf32>
    %54 = math.tanh %53 : vector<8x128xf32>
    %c8 = arith.constant 8 : index
    %c0_17 = arith.constant 0 : index
    %55 = vector.load %arg1[%c8, %c0_17] : memref<16x8xf32, #tpu.memory_space<vmem>>, vector<8x8xf32>
    %56 = vector.extract_strided_slice %55 {offsets = [0, 0], sizes = [8, 1], strides = [1, 1]} : vector<8x8xf32> to vector<8x1xf32>
    %57 = vector.broadcast %56 : vector<8x1xf32> to vector<8x128xf32>
    %58 = vector.broadcast %0 : vector<1x128xf32> to vector<8x128xf32>
    %59 = arith.mulf %57, %58 : vector<8x128xf32>
    %60 = vector.extract_strided_slice %55 {offsets = [0, 1], sizes = [8, 1], strides = [1, 1]} : vector<8x8xf32> to vector<8x1xf32>
    %61 = vector.broadcast %60 : vector<8x1xf32> to vector<8x128xf32>
    %62 = vector.broadcast %1 : vector<1x128xf32> to vector<8x128xf32>
    %63 = arith.mulf %61, %62 : vector<8x128xf32>
    %64 = arith.addf %59, %63 : vector<8x128xf32>
    %65 = vector.extract_strided_slice %55 {offsets = [0, 2], sizes = [8, 1], strides = [1, 1]} : vector<8x8xf32> to vector<8x1xf32>
    %66 = vector.broadcast %65 : vector<8x1xf32> to vector<8x128xf32>
    %67 = vector.broadcast %2 : vector<1x128xf32> to vector<8x128xf32>
    %68 = arith.mulf %66, %67 : vector<8x128xf32>
    %69 = arith.addf %64, %68 : vector<8x128xf32>
    %70 = vector.extract_strided_slice %55 {offsets = [0, 3], sizes = [8, 1], strides = [1, 1]} : vector<8x8xf32> to vector<8x1xf32>
    %71 = vector.broadcast %70 : vector<8x1xf32> to vector<8x128xf32>
    %72 = vector.broadcast %3 : vector<1x128xf32> to vector<8x128xf32>
    %73 = arith.mulf %71, %72 : vector<8x128xf32>
    %74 = arith.addf %69, %73 : vector<8x128xf32>
    %75 = vector.extract_strided_slice %55 {offsets = [0, 4], sizes = [8, 1], strides = [1, 1]} : vector<8x8xf32> to vector<8x1xf32>
    %76 = vector.broadcast %75 : vector<8x1xf32> to vector<8x128xf32>
    %77 = vector.broadcast %4 : vector<1x128xf32> to vector<8x128xf32>
    %78 = arith.mulf %76, %77 : vector<8x128xf32>
    %79 = arith.addf %74, %78 : vector<8x128xf32>
    %80 = vector.extract_strided_slice %55 {offsets = [0, 5], sizes = [8, 1], strides = [1, 1]} : vector<8x8xf32> to vector<8x1xf32>
    %81 = vector.broadcast %80 : vector<8x1xf32> to vector<8x128xf32>
    %82 = vector.broadcast %5 : vector<1x128xf32> to vector<8x128xf32>
    %83 = arith.mulf %81, %82 : vector<8x128xf32>
    %84 = arith.addf %79, %83 : vector<8x128xf32>
    %85 = vector.extract_strided_slice %55 {offsets = [0, 6], sizes = [8, 1], strides = [1, 1]} : vector<8x8xf32> to vector<8x1xf32>
    %86 = vector.broadcast %85 : vector<8x1xf32> to vector<8x128xf32>
    %87 = vector.broadcast %6 : vector<1x128xf32> to vector<8x128xf32>
    %88 = arith.mulf %86, %87 : vector<8x128xf32>
    %89 = arith.addf %84, %88 : vector<8x128xf32>
    %90 = vector.extract_strided_slice %55 {offsets = [0, 7], sizes = [8, 1], strides = [1, 1]} : vector<8x8xf32> to vector<8x1xf32>
    %91 = vector.broadcast %90 : vector<8x1xf32> to vector<8x128xf32>
    %92 = vector.broadcast %7 : vector<1x128xf32> to vector<8x128xf32>
    %93 = arith.mulf %91, %92 : vector<8x128xf32>
    %94 = arith.addf %89, %93 : vector<8x128xf32>
    %95 = vector.broadcast %9 : vector<1x128xf32> to vector<8x128xf32>
    %96 = arith.addf %94, %95 : vector<8x128xf32>
    %97 = math.tanh %96 : vector<8x128xf32>
    %c0_18 = arith.constant 0 : index
    %c0_19 = arith.constant 0 : index
    %c0_20 = arith.constant 0 : index
    %98 = vector.load %arg3[%c0_18, %c0_19, %c0_20] : memref<1x128x128xbf16, #tpu.memory_space<vmem>>, vector<1x128x128xbf16>
    %99 = vector.shape_cast %98 : vector<1x128x128xbf16> to vector<128x128xbf16>
    %c1_21 = arith.constant 1 : index
    %c0_22 = arith.constant 0 : index
    %c0_23 = arith.constant 0 : index
    %100 = vector.load %arg4[%c1_21, %c0_22, %c0_23] : memref<2x1x128xf32, #tpu.memory_space<vmem>>, vector<1x1x128xf32>
    %101 = vector.shape_cast %100 : vector<1x1x128xf32> to vector<1x128xf32>
    %102 = arith.truncf %54 : vector<8x128xf32> to vector<8x128xbf16>
    %cst = arith.constant dense<0.000000e+00> : vector<8x128xf32>
    %103 = tpu.matmul %102, %99, %cst {dimension_numbers = #tpu.dot_dimension_numbers<[1], [0], [0], [1], [0, 0, 1, 1], [], []>} : vector<8x128xbf16>, vector<128x128xbf16>, vector<8x128xf32> -> vector<8x128xf32>
    %104 = vector.broadcast %101 : vector<1x128xf32> to vector<8x128xf32>
    %105 = arith.addf %103, %104 : vector<8x128xf32>
    %106 = math.tanh %105 : vector<8x128xf32>
    %107 = arith.truncf %97 : vector<8x128xf32> to vector<8x128xbf16>
    %cst_24 = arith.constant dense<0.000000e+00> : vector<8x128xf32>
    %108 = tpu.matmul %107, %99, %cst_24 {dimension_numbers = #tpu.dot_dimension_numbers<[1], [0], [0], [1], [0, 0, 1, 1], [], []>} : vector<8x128xbf16>, vector<128x128xbf16>, vector<8x128xf32> -> vector<8x128xf32>
    %109 = vector.broadcast %101 : vector<1x128xf32> to vector<8x128xf32>
    %110 = arith.addf %108, %109 : vector<8x128xf32>
    %111 = math.tanh %110 : vector<8x128xf32>
    %112 = arith.truncf %106 : vector<8x128xf32> to vector<8x128xbf16>
    %cst_25 = arith.constant dense<0.000000e+00> : vector<8x4xf32>
    %113 = tpu.matmul %112, %10, %cst_25 {dimension_numbers = #tpu.dot_dimension_numbers<[1], [0], [0], [1], [0, 0, 1, 1], [], []>} : vector<8x128xbf16>, vector<128x4xbf16>, vector<8x4xf32> -> vector<8x4xf32>
    %114 = vector.broadcast %11 : vector<1x4xf32> to vector<8x4xf32>
    %115 = arith.addf %113, %114 : vector<8x4xf32>
    %c0_26 = arith.constant 0 : index
    %c0_27 = arith.constant 0 : index
    %116 = vector.load %arg7[%c0_26, %c0_27] : memref<16x4xf32, #tpu.memory_space<vmem>>, vector<8x4xf32>
    tpu.vector_store %arg7[%c0_26, %c0_27], %115 {strides = array<i32>} : memref<16x4xf32, #tpu.memory_space<vmem>>, vector<8x4xf32>,
    %117 = arith.truncf %111 : vector<8x128xf32> to vector<8x128xbf16>
    %cst_28 = arith.constant dense<0.000000e+00> : vector<8x4xf32>
    %118 = tpu.matmul %117, %10, %cst_28 {dimension_numbers = #tpu.dot_dimension_numbers<[1], [0], [0], [1], [0, 0, 1, 1], [], []>} : vector<8x128xbf16>, vector<128x4xbf16>, vector<8x4xf32> -> vector<8x4xf32>
    %119 = vector.broadcast %11 : vector<1x4xf32> to vector<8x4xf32>
    %120 = arith.addf %118, %119 : vector<8x4xf32>
    %c8_29 = arith.constant 8 : index
    %c0_30 = arith.constant 0 : index
    %121 = vector.load %arg7[%c8_29, %c0_30] : memref<16x4xf32, #tpu.memory_space<vmem>>, vector<8x4xf32>
    tpu.vector_store %arg7[%c8_29, %c0_30], %120 {strides = array<i32>} : memref<16x4xf32, #tpu.memory_space<vmem>>, vector<8x4xf32>,
    return
  }
  func.func @transform_0(%arg0: i32) -> (i32, i32) {
    %c0_i32 = arith.constant 0 : i32
    %c0_i32_0 = arith.constant 0 : i32
    return %arg0, %c0_i32 : i32, i32
  }
  func.func @transform_1(%arg0: i32) -> (i32, i32) {
    %c0_i32 = arith.constant 0 : i32
    %c0_i32_0 = arith.constant 0 : i32
    %c0_i32_1 = arith.constant 0 : i32
    return %c0_i32, %c0_i32_0 : i32, i32
  }
  func.func @transform_2(%arg0: i32) -> (i32, i32, i32) {
    %c0_i32 = arith.constant 0 : i32
    %c0_i32_0 = arith.constant 0 : i32
    %c0_i32_1 = arith.constant 0 : i32
    %c0_i32_2 = arith.constant 0 : i32
    return %c0_i32, %c0_i32_0, %c0_i32_1 : i32, i32, i32
  }
  func.func @transform_3(%arg0: i32) -> (i32, i32, i32) {
    %c0_i32 = arith.constant 0 : i32
    %c0_i32_0 = arith.constant 0 : i32
    %c0_i32_1 = arith.constant 0 : i32
    %c0_i32_2 = arith.constant 0 : i32
    return %c0_i32, %c0_i32_0, %c0_i32_1 : i32, i32, i32
  }
  func.func @transform_4(%arg0: i32) -> (i32, i32) {
    %c0_i32 = arith.constant 0 : i32
    %c0_i32_0 = arith.constant 0 : i32
    %c0_i32_1 = arith.constant 0 : i32
    return %c0_i32, %c0_i32_0 : i32, i32
  }
  func.func @transform_5(%arg0: i32) -> (i32, i32) {
    %c0_i32 = arith.constant 0 : i32
    %c0_i32_0 = arith.constant 0 : i32
    %c0_i32_1 = arith.constant 0 : i32
    return %c0_i32, %c0_i32_0 : i32, i32
  }
  func.func @transform_6(%arg0: i32) -> (i32, i32) {
    %c0_i32 = arith.constant 0 : i32
    %c0_i32_0 = arith.constant 0 : i32
    return %arg0, %c0_i32 : i32, i32
  }
}

</mosaic_0001>

<bundles_post_ra>
// kernel: tpu_custom_call.1
= control target key start
LH: loop header
LB: loop body
LE: loop exit
PB: predicated region body
PF: predicated region fallthrough
CT: control target
= control target key end

     0   :  { %v681_v0 = vmov 0   ;;  %v682_v3 = vmov 1   ;;  %v683_v4 = vmov 2   ;;  %v684_v5 = vmov 3   ;;  %s869_s0 = inlined_call_operand.vmem [shape: f32[16,8], index: 0, kind: input, shape index: {}]   ;;  %s870_s2 = inlined_call_operand.vmem [shape: bf16[1,128,128], index: 2, kind: input, shape index: {}]   ;;  %s871_s4 = inlined_call_operand.vmem [shape: bf16[128,4], index: 4, kind: input, shape index: {}]   ;;  %s872_s1 = inlined_call_operand.vmem [shape: f32[8,128], index: 1, kind: input, shape index: {}]   ;;  %s873_s3 = inlined_call_operand.vmem [shape: f32[2,1,128], index: 3, kind: input, shape index: {}]   ;;  %s874_s5 = inlined_call_operand.vmem [shape: f32[1,4], index: 5, kind: input, shape index: {}]   ;;  %s875_s6 = inlined_call_operand.vmem [shape: f32[16,4], index: 6, kind: output, shape index: {}]  }
   0x1   :  { %645 = vset.pattern.permute.xlu1 %v681_v0  ;;  %643 = vset.pattern.permute.xlu0 %v681_v0  ;;  %v729_v1 = vld [vmem:[%s869_s0 + $0x8] sm:$0xff]  ;;  %v50_v2 = vld [vmem:[%s869_s0] sm:$0xff]  ;;  %v685_v6 = vmov 4   ;;  %v686_v7 = vmov 5   ;;  %v657_v8 = vld [vmem:[%s870_s2 + $0x38] sm:$0xff]   ;;  %v687_v9 = vmov 0.0  }
   0x2   :  { %142 = vperm.xlu1 %645, %v729_v1   ;;  %53 = vperm.xlu0 %643, %v50_v2   ;;  %v688_v10 = vmov 7   ;;  %v658_v11 = vld [vmem:[%s870_s2 + $0x30] sm:$0xff]   ;;  %v659_v12 = vld [vmem:[%s870_s2 + $0x28] sm:$0xff]   ;;  %v689_v13 = vmov 6   ;;  %v660_v14 = vld [vmem:[%s870_s2 + $0x20] sm:$0xff]   ;;  %vm690_vm0 = vmmov 0  }
   0x3   :  { %553 = vmatprep.subr.bf16.mxu0 %v687_v9  ;;  %573 = vmatprep.subr.bf16.mxu1 %v687_v9  ;;  %v661_v15 = vld [vmem:[%s870_s2 + $0x18] sm:$0xff]   ;;  %v662_v16 = vld [vmem:[%s870_s2 + $0x10] sm:$0xff]   ;;  %v663_v17 = vld [vmem:[%s870_s2 + $0x8] sm:$0xff]   ;;  %vm441_vm1 = vcmask 31744  }
   0x4   :  { %554 = vmatpush3.bf16.msra.mxu0 %v657_v8  ;;  %574 = vmatpush3.bf16.msra.mxu1 %v657_v8  ;;  %v664_v18 = vld [vmem:[%s870_s2] sm:$0xff]  }
   0x5   :  { %555 = vmatprep.subr.bf16.mxu0 %v687_v9  ;;  %575 = vmatprep.subr.bf16.mxu1 %v687_v9  ;;  %v489_v25 = vld [vmem:[%s872_s1] ss:$0 sm:$0xff]  ;;  %v490_v26 = vld [vmem:[%s872_s1 + $0x1] ss:$0 sm:$0xff]  ;;  %v491_v30 = vld [vmem:[%s872_s1 + $0x2] ss:$0 sm:$0xff] }
   0x6   :  { %646 = vset.pattern.permute.xlu1 %v682_v3  ;;  %644 = vset.pattern.permute.xlu0 %v682_v3  ;;  %v492_v32 = vld [vmem:[%s872_s1 + $0x3] ss:$0 sm:$0xff]  ;;  %v493_v38 = vld [vmem:[%s872_s1 + $0x4] ss:$0 sm:$0xff]  ;;  %v494_v47 = vld [vmem:[%s872_s1 + $0x5] ss:$0 sm:$0xff] }
   0x7   :  { %147 = vperm.xlu1 %646, %v729_v1   ;;  %62 = vperm.xlu0 %644, %v50_v2   ;;  %v495_v51 = vld [vmem:[%s872_s1 + $0x6] ss:$0 sm:$0xff]  ;;  %v496_v52 = vld [vmem:[%s872_s1 + $0x7] ss:$0 sm:$0xff] }
   0x8   :  { %556 = vmatpush3.bf16.msra.mxu0 %v658_v11  ;;  %576 = vmatpush3.bf16.msra.mxu1 %v658_v11 }
   0x9   :  { %557 = vmatprep.subr.bf16.mxu0 %v687_v9  ;;  %577 = vmatprep.subr.bf16.mxu1 %v687_v9 }
   0xa   :  { %569 = vmatprep.mubr.msk.bf16.mxu0 %vm690_vm0, %v687_v9  ;;  %589 = vmatprep.mubr.msk.bf16.mxu1 %vm690_vm0, %v687_v9 }
   0xb   :  { %647 = vset.pattern.permute.xlu1 %v683_v4  ;;  %648 = vset.pattern.permute.xlu0 %v683_v4 }
   0xc   :  { %72 = vperm.xlu1 %647, %v50_v2   ;;  %153 = vperm.xlu0 %648, %v729_v1  }
   0xd   :  { %558 = vmatpush3.bf16.msra.mxu0 %v659_v12  ;;  %578 = vmatpush3.bf16.msra.mxu1 %v659_v12 }
   0xe   :  { %559 = vmatprep.subr.bf16.mxu0 %v687_v9  ;;  %579 = vmatprep.subr.bf16.mxu1 %v687_v9 }
  0x10   :  { %649 = vset.pattern.permute.xlu1 %v684_v5  ;;  %650 = vset.pattern.permute.xlu0 %v685_v6 }
  0x11   :  { %82 = vperm.xlu1 %649, %v50_v2   ;;  %92 = vperm.xlu0 %650, %v50_v2  }
  0x12   :  { %560 = vmatpush3.bf16.msra.mxu0 %v660_v14  ;;  %580 = vmatpush3.bf16.msra.mxu1 %v660_v14  ;;  %v665_v14 = vld [vmem:[%s871_s4 + $0x38] sm:$0xff]  }
  0x13   :  { %561 = vmatprep.subr.bf16.mxu0 %v687_v9  ;;  %581 = vmatprep.subr.bf16.mxu1 %v687_v9 }
  0x15   :  { %159 = vperm.xlu1 %649, %v729_v1   ;;  %653 = vset.pattern.permute.xlu0 %v686_v7 }
  0x16   :  { %171 = vperm.xlu0 %653, %v729_v1   ;;  %562 = vmatpush3.bf16.msra.mxu0 %v661_v15 }
  0x17   :  { %563 = vmatprep.subr.bf16.mxu0 %v687_v9  ;;  %582 = vmatpush3.bf16.msra.mxu1 %v661_v15 }
  0x18   :  { %583 = vmatprep.subr.bf16.mxu1 %v687_v9 }
  0x19   :  { %651 = vset.pattern.permute.xlu1 %v685_v6 }
  0x1a   :  { %165 = vperm.xlu1 %651, %v729_v1   ;;  %655 = vset.pattern.permute.xlu0 %v688_v10 }
  0x1b   :  { %122 = vperm.xlu0 %655, %v50_v2   ;;  %564 = vmatpush3.bf16.msra.mxu0 %v662_v16 }
  0x1c   :  { %565 = vmatprep.subr.bf16.mxu0 %v687_v9  ;;  %584 = vmatpush3.bf16.msra.mxu1 %v662_v16  ;;  %v666_v16 = vld [vmem:[%s871_s4 + $0x30] sm:$0xff]  }
  0x1d   :  { %585 = vmatprep.subr.bf16.mxu1 %v687_v9 }
  0x1e   :  { %652 = vset.pattern.permute.xlu1 %v686_v7 }
  0x1f   :  { %102 = vperm.xlu1 %652, %v50_v2   ;;  %566 = vmatpush3.bf16.msra.mxu0 %v663_v17 }
  0x20   :  { %567 = vmatprep.subr.bf16.mxu0 %v687_v9  ;;  %586 = vmatpush3.bf16.msra.mxu1 %v663_v17 }
  0x21   :  { %587 = vmatprep.subr.bf16.mxu1 %v687_v9 }
  0x23   :  { %654 = vset.pattern.permute.xlu1 %v689_v13  ;;  %568 = vmatpush3.bf16.msra.mxu0 %v664_v18 }
  0x24   :  { %112 = vperm.xlu1 %654, %v50_v2   ;;  %593 = vmatprep.subr.bf16.mxu0 %v687_v9 }
  0x25   :  { %588 = vmatpush3.bf16.msra.mxu1 %v664_v18 }
  0x26   :  { %613 = vmatprep.subr.bf16.mxu1 %v687_v9 }
  0x28   :  { %177 = vperm.xlu1 %654, %v729_v1  }
  0x2c   :  { %656 = vset.pattern.permute.xlu1 %v688_v10 }
  0x2d   :  { %183 = vperm.xlu1 %656, %v729_v1   ;;  %v497_v1 = vld [vmem:[%s873_s3] ss:$0 sm:$0xff] }
  0x7d   :  { %v143_v19 = vpop.permute.xlu1 %142  ;;  %v54_v21 = vpop.permute.xlu0 %53 }
  0x7e   :  { %v60_v27 = vmul.f32 %v489_v25, %v54_v21  ;;  %v145_v45 = vmul.f32 %v489_v25, %v143_v19  ;;  %v667_v19 = vld [vmem:[%s871_s4 + $0x28] sm:$0xff]   ;;  %v669_v21 = vld [vmem:[%s871_s4 + $0x18] sm:$0xff]   ;;  %v499_v25 = vld [vmem:[%s873_s3 + $0x1] ss:$0 sm:$0xff] }
  0x82   :  { %v148_v20 = vpop.permute.xlu1 %147  ;;  %v63_v23 = vpop.permute.xlu0 %62 }
  0x83   :  { %v69_v28 = vmul.f32 %v490_v26, %v63_v23  ;;  %v150_v40 = vmul.f32 %v490_v26, %v148_v20  ;;  %v668_v20 = vld [vmem:[%s871_s4 + $0x20] sm:$0xff]   ;;  %v671_v23 = vld [vmem:[%s871_s4 + $0x8] sm:$0xff]  }
  0x85   :  { %v70_v33 = vadd.f32 %v69_v28, %v60_v27  ;;  %v151_v49 = vadd.f32 %v150_v40, %v145_v45 }
  0x87   :  { %v73_v22 = vpop.permute.xlu1 %72  ;;  %v154_v31 = vpop.permute.xlu0 %153 }
  0x88   :  { %v79_v34 = vmul.f32 %v491_v30, %v73_v22  ;;  %v156_v46 = vmul.f32 %v491_v30, %v154_v31  ;;  %v670_v22 = vld [vmem:[%s871_s4 + $0x10] sm:$0xff]  }
  0x8a   :  { %v80_v39 = vadd.f32 %v79_v34, %v70_v33  ;;  %v157_v55 = vadd.f32 %v156_v46, %v151_v49 }
  0x8c   :  { %v83_v24 = vpop.permute.xlu1 %82  ;;  %v93_v35 = vpop.permute.xlu0 %92 }
  0x8d   :  { %v89_v37 = vmul.f32 %v492_v32, %v83_v24  ;;  %v99_v43 = vmul.f32 %v493_v38, %v93_v35  ;;  %v672_v24 = vld [vmem:[%s871_s4] sm:$0xff]  }
  0x8f   :  { %v90_v42 = vadd.f32 %v89_v37, %v80_v39  ;;  %v508_v39 = vld [vmem:[%s874_s5] ss:$0 sm:$0xff] }
  0x90   :  { %v160_v29 = vpop.permute.xlu1 %159 }
  0x91   :  { %v172_v41 = vpop.permute.xlu0 %171  ;;  %v162_v50 = vmul.f32 %v492_v32, %v160_v29  ;;  %v100_v54 = vadd.f32 %v99_v43, %v90_v42 }
  0x92   :  { %v174_v0 = vmul.f32 %v494_v47, %v172_v41 }
  0x93   :  { %v163_v61 = vadd.f32 %v162_v50, %v157_v55 }
  0x95   :  { %v166_v36 = vpop.permute.xlu1 %165 }
  0x96   :  { %v123_v53 = vpop.permute.xlu0 %122  ;;  %v168_v56 = vmul.f32 %v493_v38, %v166_v36 }
  0x97   :  { %v129_v60 = vmul.f32 %v496_v52, %v123_v53 }
  0x98   :  { %v169_v63 = vadd.f32 %v168_v56, %v163_v61 }
  0x9a   :  { %v103_v44 = vpop.permute.xlu1 %102  ;;  %v175_v6 = vadd.f32 %v174_v0, %v169_v63 }
  0x9b   :  { %v109_v48 = vmul.f32 %v494_v47, %v103_v44 }
  0x9d   :  { %v110_v58 = vadd.f32 %v109_v48, %v100_v54 }
  0x9f   :  { %v113_v57 = vpop.permute.xlu1 %112 }
  0xa0   :  { %v119_v59 = vmul.f32 %v495_v51, %v113_v57 }
  0xa2   :  { %v120_v62 = vadd.f32 %v119_v59, %v110_v58 }
  0xa3   :  { %v178_v2 = vpop.permute.xlu1 %177 }
  0xa4   :  { %v130_v3 = vadd.f32 %v129_v60, %v120_v62  ;;  %v180_v4 = vmul.f32 %v495_v51, %v178_v2 }
  0xa6   :  { %v137_v5 = vadd.f32 %v497_v1, %v130_v3  ;;  %v181_v8 = vadd.f32 %v180_v4, %v175_v6 }
  0xa8   :  { %673 = vtanh.f32 %v137_v5  ;;  %v184_v7 = vpop.permute.xlu1 %183 }
  0xa9   :  { %v186_v10 = vmul.f32 %v496_v52, %v184_v7 }
  0xab   :  { %v187_v11 = vadd.f32 %v186_v10, %v181_v8 }
  0xad   :  { %v188_v12 = vadd.f32 %v497_v1, %v187_v11 }
  0xaf   :  { %675 = vtanh.f32 %v188_v12 }
  0xb5   :  { %v674_v13 = vpop.eup %673 }
  0xb6   :  { %v208_v15 = vpack.c.bf16 %v674_v13, %v674_v13 }
  0xb8   :  { %570 = vmatmul.mubr.bf16.vlgmr.msra.gmra.mxu0 %v208_v15 }
  0xb9   :  { %594 = vmatpush3.bf16.msra.mxu0 %v665_v14  ;;  %609 = vmatprep.mubr.msk.bf16.mxu0 %vm690_vm0, %v687_v9 }
  0xba   :  { %595 = vmatprep.subr.bf16.mxu0 %v687_v9 }
  0xbc   :  { %v676_v17 = vpop.eup %675 }
  0xbd   :  { %v304_v18 = vpack.c.bf16 %v676_v17, %v676_v17  ;;  %596 = vmatpush3.bf16.msra.mxu0 %v666_v16 }
  0xbe   :  { %597 = vmatprep.subr.bf16.mxu0 %v687_v9 }
  0xbf   :  { %590 = vmatmul.mubr.bf16.vlgmr.msra.gmra.mxu1 %v304_v18 }
  0xc0   :  { %614 = vmatpush3.bf16.msra.mxu1 %v665_v14  ;;  %629 = vmatprep.mubr.msk.bf16.mxu1 %vm690_vm0, %v687_v9 }
  0xc1   :  { %598 = vmatpush3.bf16.msra.mxu0 %v667_v19  ;;  %615 = vmatprep.subr.bf16.mxu1 %v687_v9 }
  0xc2   :  { %599 = vmatprep.subr.bf16.mxu0 %v687_v9 }
  0xc4   :  { %616 = vmatpush3.bf16.msra.mxu1 %v666_v16 }
  0xc5   :  { %617 = vmatprep.subr.bf16.mxu1 %v687_v9  ;;  %600 = vmatpush3.bf16.msra.mxu0 %v668_v20 }
  0xc6   :  { %601 = vmatprep.subr.bf16.mxu0 %v687_v9 }
  0xc8   :  { %618 = vmatpush3.bf16.msra.mxu1 %v667_v19 }
  0xc9   :  { %619 = vmatprep.subr.bf16.mxu1 %v687_v9  ;;  %602 = vmatpush3.bf16.msra.mxu0 %v669_v21 }
  0xca   :  { %603 = vmatprep.subr.bf16.mxu0 %v687_v9 }
  0xcc   :  { %620 = vmatpush3.bf16.msra.mxu1 %v668_v20 }
  0xcd   :  { %621 = vmatprep.subr.bf16.mxu1 %v687_v9  ;;  %604 = vmatpush3.bf16.msra.mxu0 %v670_v22 }
  0xce   :  { %605 = vmatprep.subr.bf16.mxu0 %v687_v9 }
  0xd0   :  { %622 = vmatpush3.bf16.msra.mxu1 %v669_v21 }
  0xd1   :  { %623 = vmatprep.subr.bf16.mxu1 %v687_v9  ;;  %606 = vmatpush3.bf16.msra.mxu0 %v671_v23 }
  0xd2   :  { %607 = vmatprep.subr.bf16.mxu0 %v687_v9 }
  0xd4   :  { %624 = vmatpush3.bf16.msra.mxu1 %v670_v22 }
  0xd5   :  { %625 = vmatprep.subr.bf16.mxu1 %v687_v9  ;;  %608 = vmatpush3.bf16.msra.mxu0 %v672_v24 }
  0xd8   :  { %626 = vmatpush3.bf16.msra.mxu1 %v671_v23 }
  0xd9   :  { %627 = vmatprep.subr.bf16.mxu1 %v687_v9 }
  0xdc   :  { %628 = vmatpush3.bf16.msra.mxu1 %v672_v24 }
 0x178   :  { %v297_v26 = vpop.f32.mrf.mxu0 }
 0x179   :  { %v298_v27 = vadd.f32 %v499_v25, %v297_v26 }
 0x17a   :  { %v571_v28 = vpop.f32.mrf.mxu0 }
 0x17b   :  { %677 = vtanh.f32 %v298_v27 }
 0x17c   :  { %v300_v29 = vpop.f32.mrf.mxu0 }
 0x17e   :  { %v572_v30 = vpop.f32.mrf.mxu0 }
 0x17f   :  { %v339_v31 = vpop.f32.mrf.mxu1 }
 0x180   :  { %v340_v32 = vadd.f32 %v499_v25, %v339_v31 }
 0x181   :  { %v591_v33 = vpop.f32.mrf.mxu1 }
 0x182   :  { %679 = vtanh.f32 %v340_v32 }
 0x183   :  { %v342_v9 = vpop.f32.mrf.mxu1 }
 0x185   :  { %v592_v34 = vpop.f32.mrf.mxu1 }
 0x188   :  { %v678_v35 = vpop.eup %677 }
 0x189   :  { %v346_v36 = vpack.c.bf16 %v678_v35, %v678_v35 }
 0x18b   :  { %610 = vmatmul.mubr.bf16.vlgmr.msra.gmra.mxu0 %v346_v36 }
 0x18f   :  { %v680_v37 = vpop.eup %679 }
 0x190   :  { %v443_v38 = vpack.c.bf16 %v680_v37, %v680_v37 }
 0x192   :  { %630 = vmatmul.mubr.bf16.vlgmr.msra.gmra.mxu1 %v443_v38 }
 0x24b   :  { %v435_v40 = vpop.f32.mrf.mxu0 }
 0x24c   :  { %v436_v41 = vadd.f32 %v508_v39, %v435_v40 }
 0x24d   :  { %v611_v42 = vpop.f32.mrf.mxu0 }
 0x24e   :  { %442 = vst.msk [vmem:[%s875_s6] sm:$0xff] %vm441_vm1, %v436_v41 }
 0x24f   :  { %v438_v43 = vpop.f32.mrf.mxu0 }
 0x251   :  { %v612_v44 = vpop.f32.mrf.mxu0 }
 0x252   :  { %v478_v45 = vpop.f32.mrf.mxu1 }
 0x253   :  { %v479_v46 = vadd.f32 %v508_v39, %v478_v45 }
 0x254   :  { %v631_v47 = vpop.f32.mrf.mxu1 }
 0x255   :  { %484 = vst.msk [vmem:[%s875_s6 + $0x8] sm:$0xff] %vm441_vm1, %v479_v46 }
 0x256   :  { %v481_v48 = vpop.f32.mrf.mxu1 }
 0x258   :  { %v632_v49 = vpop.f32.mrf.mxu1 }

</bundles_post_ra>
